<compile_context>
chip_gen: v6e
topology: v6e:2x2x1
jax: 0.10.0
libtpu: 0.0.40
codegen_flags: <defaults>
</compile_context>

<pallas_src>
import functools

import jax
import jax.numpy as jnp
from jax import lax
from jax.experimental import pallas as pl
from jax.experimental.pallas import tpu as pltpu


def _focal_kernel(logits_ref, target_ref, out_ref, *, gamma, alpha, use_mask,
                  n_batch, n_time):
    """Focal loss partial sums for one (batch-tile, time-tile) block.

    logits_ref : [bb, C, tt]  (classes in sublanes, time in lanes)
    target_ref : [bb, tt]     int32 class ids
    out_ref    : [bb, 1]      f32 per-batch-row partial sum (accumulated
                              across the time grid axis)
    """
    bb, _, tt = logits_ref.shape
    b0 = pl.program_id(0) * bb
    t0 = pl.program_id(1) * tt

    x = logits_ref[...].astype(jnp.float32)            # [bb, C, tt]
    tgt = target_ref[...]                              # [bb, tt] int32

    # log-softmax over the class (sublane) axis, target class only.
    m = jnp.max(x, axis=1, keepdims=True)              # [bb, 1, tt]
    xm = x - m                                         # [bb, C, tt]
    denom = jnp.sum(jnp.exp(xm), axis=1)               # [bb, tt] dense tail
    classes = lax.broadcasted_iota(jnp.int32, x.shape, 1)
    xm_t = jnp.sum(jnp.where(classes == tgt[:, None, :], xm, 0.0), axis=1)
    lp_t = xm_t - jnp.log(denom)                       # log p(target) <= 0

    sub_pt = 1.0 - jnp.exp(lp_t)                       # one EUP exp / position
    g = float(gamma)
    if g.is_integer() and 0 < int(g) <= 4:
        pw = sub_pt
        for _ in range(int(g) - 1):                    # plain VPU multiplies
            pw = pw * sub_pt
    else:
        pw = jnp.power(jnp.maximum(sub_pt, 1e-12), g)  # clamp: avoid 0**gamma
    fl = (-alpha) * pw * lp_t                          # [bb, tt]

    # Mask out-of-bounds rows/cols of (possibly partial) edge blocks plus the
    # module's target>0 padding mask.  Applied BEFORE the block reduction so
    # ragged-tail garbage never reaches the accumulated sum (all earlier
    # reductions are per-position over the class axis, so garbage positions
    # cannot contaminate valid ones).
    row = b0 + lax.broadcasted_iota(jnp.int32, (bb, tt), 0)
    col = t0 + lax.broadcasted_iota(jnp.int32, (bb, tt), 1)
    keep = (row < n_batch) & (col < n_time)
    if use_mask:
        keep = keep & (tgt > 0)
    fl = jnp.where(keep, fl, 0.0)

    @pl.when(pl.program_id(1) == 0)
    def _():
        out_ref[...] = jnp.zeros_like(out_ref)
    out_ref[...] += jnp.sum(fl, axis=1, keepdims=True)  # [bb, 1]


def focal_loss(logits, target, *, gamma=2.0, alpha=1.0, class_num=None,
               block_bytes=2 * 1024 * 1024):
    """Pallas implementation of Focalloss.forward.

    logits: [B, class_num, T] (softmax over axis 1) or [N, class_num]
    target: [B, T] or [N] integer class ids
    Returns a scalar f32 loss (mean over B*T; masked rows count in the
    denominator, matching the PyTorch module's .mean()).
    """
    if logits.ndim == 3:
        B, C, T = logits.shape
        assert class_num is None or class_num == C
        x = logits                                      # native [B, C, T]
        tgt = target.astype(jnp.int32)                  # [B, T]
        use_mask = True
        n_valid = B * T
    elif logits.ndim == 2:
        # TODO(synk): this path materializes one transpose copy; acceptable
        # for the small classifier-head shapes it serves (see review note).
        n_rows, C = logits.shape
        assert class_num is None or class_num == C
        x = jnp.transpose(logits, (1, 0))[None, :, :]   # [1, C, n_rows]
        tgt = target.reshape(1, n_rows).astype(jnp.int32)
        B, T = 1, n_rows
        use_mask = False
        n_valid = n_rows
    else:
        raise NotImplementedError(f"dim {logits.ndim} not supported")

    itemsize = jnp.dtype(x.dtype).itemsize

    # ---- tiling -----------------------------------------------------------
    # Lane axis = time.  Pad only when T < 128 (tiny copy); otherwise rely on
    # partial edge blocks + in-kernel masking (no full-tensor pad).
    if T < 128:
        T_eff = 128
        x = jnp.pad(x, ((0, 0), (0, 0), (0, T_eff - T)))
        tgt = jnp.pad(tgt, ((0, 0), (0, T_eff - T)))
        tt_cap = 128
    else:
        T_eff = T
        tt_cap = (T // 128) * 128        # block never exceeds the array dim

    # Sublane/batch axis: 8 rows per step when possible (dense tail vregs);
    # grow in multiples of 8 only if the time axis alone cannot reach the
    # per-block byte target, while keeping >=2 batch tiles for megacore.
    bb = B if B < 8 else 8
    if B >= 16:
        max_bb = min((B // 8) * 8, 64)
        while (bb + 8 <= max_bb and B >= 2 * (bb + 8)
               and bb * C * tt_cap * itemsize < block_bytes):
            bb += 8

    # Time tile from the byte target (amortizes per-grid-step overhead).
    per_lane_bytes = max(bb * C * itemsize, 1)
    tt = max(128, (block_bytes // per_lane_bytes) // 128 * 128)
    tt = min(tt, tt_cap)
    nb = pl.cdiv(B, bb)
    # Keep a few grid steps for DMA/compute pipelining, but never shrink the
    # logits block below ~256 KiB (where per-step overhead starts to bite).
    while (nb * pl.cdiv(T_eff, tt) < 6 and tt > 128
           and tt * per_lane_bytes > 256 * 1024):
        tt = max(128, (tt // 2) // 128 * 128)
    nt = pl.cdiv(T_eff, tt)

    logits_block_bytes = bb * C * tt * itemsize
    tgt_block_bytes = bb * tt * 4
    vmem_limit = int(min(32 * 1024 * 1024,
                         max(8 * 1024 * 1024,
                             4 * (logits_block_bytes + tgt_block_bytes))))

    kernel = functools.partial(
        _focal_kernel, gamma=float(gamma), alpha=float(alpha),
        use_mask=use_mask, n_batch=B, n_time=T)

    per_row = pl.pallas_call(
        kernel,
        out_shape=jax.ShapeDtypeStruct((B, 1), jnp.float32),
        grid=(nb, nt),
        in_specs=[
            pl.BlockSpec((bb, C, tt), lambda b, t: (b, 0, t)),
            pl.BlockSpec((bb, tt), lambda b, t: (b, t)),
        ],
        out_specs=pl.BlockSpec((bb, 1), lambda b, t: (b, 0)),
        compiler_params=pltpu.CompilerParams(
            dimension_semantics=("parallel", "arbitrary"),
            vmem_limit_bytes=vmem_limit),
    )(x, tgt)

    return jnp.sum(per_row) / n_valid


def _reference_focal_loss(logits, target, gamma=2.0, alpha=1.0, class_num=None):
    """Pure-JAX reference mirroring the PyTorch forward (3-D path)."""
    logprobs = jax.nn.log_softmax(logits, axis=1)            # [B, C, T]
    one_hot = jax.nn.one_hot(target, class_num)              # [B, T, C]
    mask = (target > 0)[..., None]                           # [B, T, 1]
    logprobs = jnp.transpose(logprobs, (0, 2, 1))            # [B, T, C]
    score = one_hot * logprobs
    sub_pt = 1.0 - jnp.exp(score)
    fl = -alpha * sub_pt ** gamma * score
    loss = jnp.sum(fl * mask, axis=-1)                       # [B, T]
    return jnp.mean(loss)


if __name__ == "__main__":
    key = jax.random.PRNGKey(0)
    k1, k2, k3, k4, k5, k6 = jax.random.split(key, 6)
    C = 10

    # 1) tiny shape (single tile; time padded below one 128-lane vreg).
    B1, T1 = 2, 8
    logits1 = jax.random.normal(k1, (B1, C, T1), dtype=jnp.float32)
    target1 = jax.random.randint(k2, (B1, T1), 0, C, dtype=jnp.int32)
    out1 = jax.block_until_ready(focal_loss(logits1, target1, class_num=C))
    ref1 = _reference_focal_loss(logits1, target1, class_num=C)
    assert jnp.allclose(out1, ref1, atol=1e-5, rtol=1e-5), (out1, ref1)

    # 2) ragged time axis (multiple time tiles + partial edge block, no pad).
    B2, T2 = 2, 300
    logits2 = jax.random.normal(k3, (B2, C, T2), dtype=jnp.float32)
    target2 = jax.random.randint(k4, (B2, T2), 0, C, dtype=jnp.int32)
    out2 = jax.block_until_ready(focal_loss(logits2, target2, class_num=C))
    ref2 = _reference_focal_loss(logits2, target2, class_num=C)
    assert jnp.allclose(out2, ref2, atol=1e-5, rtol=1e-5), (out2, ref2)

    # 3) batch tiling with a partial batch edge block (B=10 -> bb=8, nb=2).
    B3, T3 = 10, 200
    logits3 = jax.random.normal(k5, (B3, C, T3), dtype=jnp.float32)
    target3 = jax.random.randint(k6, (B3, T3), 0, C, dtype=jnp.int32)
    out3 = jax.block_until_ready(focal_loss(logits3, target3, class_num=C))
    ref3 = _reference_focal_loss(logits3, target3, class_num=C)
    assert jnp.allclose(out3, ref3, atol=1e-5, rtol=1e-5), (out3, ref3)

    print("KERNEL_OK")
</pallas_src>

<mosaic_0001>
module attributes {stable_mosaic.version = 11 : i64} {
  func.func @_focal_kernel(%arg0: i32, %arg1: i32, %arg2: memref<2x10x128xf32, #tpu.memory_space<vmem>>, %arg3: memref<2x128xi32, #tpu.memory_space<vmem>>, %arg4: memref<2x1xf32, #tpu.memory_space<vmem>>) attributes {dimension_semantics = [#tpu.dimension_semantics<parallel>, #tpu.dimension_semantics<arbitrary>], iteration_bounds = array<i64: 1, 1>, scalar_prefetch = 0 : i64, scratch_operands = 0 : i64, tpu.core_type = #tpu.core_type<tc>, window_params = [{transform_indices = @transform_0, window_bounds = array<i64: 2, 10, 128>}, {transform_indices = @transform_1, window_bounds = array<i64: 2, 128>}, {transform_indices = @transform_2, window_bounds = array<i64: 2, 1>}]} {
    %c2_i32 = arith.constant 2 : i32
    %0 = arith.muli %arg0, %c2_i32 : i32
    %c128_i32 = arith.constant 128 : i32
    %1 = arith.muli %arg1, %c128_i32 : i32
    %c0 = arith.constant 0 : index
    %c0_0 = arith.constant 0 : index
    %c0_1 = arith.constant 0 : index
    %2 = vector.load %arg2[%c0, %c0_0, %c0_1] : memref<2x10x128xf32, #tpu.memory_space<vmem>>, vector<2x10x128xf32>
    %c0_2 = arith.constant 0 : index
    %c0_3 = arith.constant 0 : index
    %3 = vector.load %arg3[%c0_2, %c0_3] : memref<2x128xi32, #tpu.memory_space<vmem>>, vector<2x128xi32>
    %cst = arith.constant dense<0xFF800000> : vector<2x128xf32>
    %4 = vector.multi_reduction <maximumf>, %2, %cst [1] : vector<2x10x128xf32> to vector<2x128xf32>
    %5 = vector.shape_cast %4 : vector<2x128xf32> to vector<2x1x128xf32>
    %6 = vector.broadcast %5 : vector<2x1x128xf32> to vector<2x10x128xf32>
    %7 = arith.subf %2, %6 : vector<2x10x128xf32>
    %8 = math.exp %7 : vector<2x10x128xf32>
    %cst_4 = arith.constant dense<0.000000e+00> : vector<2x128xf32>
    %9 = vector.multi_reduction <add>, %8, %cst_4 [1] : vector<2x10x128xf32> to vector<2x128xf32>
    %10 = tpu.iota {dimensions = array<i32: 1>} : vector<2x10x128xi32>
    %11 = vector.shape_cast %3 : vector<2x128xi32> to vector<2x1x128xi32>
    %12 = vector.broadcast %11 : vector<2x1x128xi32> to vector<2x10x128xi32>
    %13 = arith.cmpi eq, %10, %12 : vector<2x10x128xi32>
    %cst_5 = arith.constant 0.000000e+00 : f32
    %14 = vector.broadcast %cst_5 : f32 to vector<2x10x128xf32>
    %15 = arith.select %13, %7, %14 : vector<2x10x128xi1>, vector<2x10x128xf32>
    %cst_6 = arith.constant dense<0.000000e+00> : vector<2x128xf32>
    %16 = vector.multi_reduction <add>, %15, %cst_6 [1] : vector<2x10x128xf32> to vector<2x128xf32>
    %17 = math.log %9 : vector<2x128xf32>
    %18 = arith.subf %16, %17 : vector<2x128xf32>
    %19 = math.exp %18 : vector<2x128xf32>
    %cst_7 = arith.constant 1.000000e+00 : f32
    %20 = vector.broadcast %cst_7 : f32 to vector<2x128xf32>
    %21 = arith.subf %20, %19 : vector<2x128xf32>
    %22 = arith.mulf %21, %21 : vector<2x128xf32>
    %cst_8 = arith.constant -1.000000e+00 : f32
    %23 = vector.broadcast %cst_8 : f32 to vector<2x128xf32>
    %24 = arith.mulf %23, %22 : vector<2x128xf32>
    %25 = arith.mulf %24, %18 : vector<2x128xf32>
    %26 = tpu.iota {dimensions = array<i32: 0>} : vector<2x128xi32>
    %27 = vector.broadcast %0 : i32 to vector<2x128xi32>
    %28 = arith.addi %27, %26 : vector<2x128xi32>
    %29 = tpu.iota {dimensions = array<i32: 1>} : vector<2x128xi32>
    %30 = vector.broadcast %1 : i32 to vector<2x128xi32>
    %31 = arith.addi %30, %29 : vector<2x128xi32>
    %c2_i32_9 = arith.constant 2 : i32
    %32 = vector.broadcast %c2_i32_9 : i32 to vector<2x128xi32>
    %33 = arith.cmpi slt, %28, %32 : vector<2x128xi32>
    %c8_i32 = arith.constant 8 : i32
    %34 = vector.broadcast %c8_i32 : i32 to vector<2x128xi32>
    %35 = arith.cmpi slt, %31, %34 : vector<2x128xi32>
    %36 = arith.andi %33, %35 : vector<2x128xi1>
    %c0_i32 = arith.constant 0 : i32
    %37 = vector.broadcast %c0_i32 : i32 to vector<2x128xi32>
    %38 = arith.cmpi sgt, %3, %37 : vector<2x128xi32>
    %39 = arith.andi %36, %38 : vector<2x128xi1>
    %cst_10 = arith.constant 0.000000e+00 : f32
    %40 = vector.broadcast %cst_10 : f32 to vector<2x128xf32>
    %41 = arith.select %39, %25, %40 : vector<2x128xi1>, vector<2x128xf32>
    %c0_i32_11 = arith.constant 0 : i32
    %42 = arith.cmpi eq, %arg1, %c0_i32_11 : i32
    %43 = arith.extui %42 : i1 to i32
    %c0_i32_12 = arith.constant 0 : i32
    %44 = arith.cmpi ne, %43, %c0_i32_12 : i32
    scf.if %44 {
      %cst_18 = arith.constant 0.000000e+00 : f32
      %50 = vector.broadcast %cst_18 : f32 to vector<2x1xf32>
      %c0_19 = arith.constant 0 : index
      %c0_20 = arith.constant 0 : index
      %51 = vector.load %arg4[%c0_19, %c0_20] : memref<2x1xf32, #tpu.memory_space<vmem>>, vector<2x1xf32>
      tpu.vector_store %arg4[%c0_19, %c0_20], %50 {strides = array<i32>} : memref<2x1xf32, #tpu.memory_space<vmem>>, vector<2x1xf32>,
    } else {
    }
    %c0_13 = arith.constant 0 : index
    %c0_14 = arith.constant 0 : index
    %45 = vector.load %arg4[%c0_13, %c0_14] : memref<2x1xf32, #tpu.memory_space<vmem>>, vector<2x1xf32>
    %cst_15 = arith.constant dense<0.000000e+00> : vector<2xf32>
    %46 = vector.multi_reduction <add>, %41, %cst_15 [1] : vector<2x128xf32> to vector<2xf32>
    %47 = vector.shape_cast %46 : vector<2xf32> to vector<2x1xf32>
    %48 = arith.addf %45, %47 : vector<2x1xf32>
    %c0_16 = arith.constant 0 : index
    %c0_17 = arith.constant 0 : index
    %49 = vector.load %arg4[%c0_16, %c0_17] : memref<2x1xf32, #tpu.memory_space<vmem>>, vector<2x1xf32>
    tpu.vector_store %arg4[%c0_16, %c0_17], %48 {strides = array<i32>} : memref<2x1xf32, #tpu.memory_space<vmem>>, vector<2x1xf32>,
    return
  }
  func.func @transform_0(%arg0: i32, %arg1: i32) -> (i32, i32, i32) {
    %c0_i32 = arith.constant 0 : i32
    %c0_i32_0 = arith.constant 0 : i32
    return %arg0, %c0_i32, %arg1 : i32, i32, i32
  }
  func.func @transform_1(%arg0: i32, %arg1: i32) -> (i32, i32) {
    %c0_i32 = arith.constant 0 : i32
    return %arg0, %arg1 : i32, i32
  }
  func.func @transform_2(%arg0: i32, %arg1: i32) -> (i32, i32) {
    %c0_i32 = arith.constant 0 : i32
    %c0_i32_0 = arith.constant 0 : i32
    return %arg0, %c0_i32 : i32, i32
  }
}

</mosaic_0001>

<bundles_post_ra>
// kernel: tpu_custom_call.1
= control target key start
LH: loop header
LB: loop body
LE: loop exit
PB: predicated region body
PF: predicated region fallthrough
CT: control target
= control target key end

     0   :  { %vm18_vm0 = vcmask 1041408   ;;  %vm159_vm1 = vcmask 1024   ;;  %v190_v5 = vmov 0.0   ;;  %v63_v9 = vlaneseq  ;;  %s254_s0 = inlined_call_operand.vmem [shape: f32[2,10,128], index: 0, kind: input, shape index: {}]   ;;  %s255_s2 = inlined_call_operand.vmem [shape: f32[2,1], index: 2, kind: output, shape index: {}]   ;;  %s256_s1 = inlined_call_operand.vmem [shape: s32[2,128], index: 1, kind: input, shape index: {}]  }
   0x1   :  { %v13_v0 = vld [vmem:[%s254_s0] sm:$0xff]  ;;  %v14_v1 = vld [vmem:[%s254_s0 + $0x8] sm:$0x3]  ;;  %v15_v2 = vld [vmem:[%s254_s0 + $0x10] sm:$0xff]  ;;  %160 = vst.msk [vmem:[%s255_s2] sm:$0x3] %vm159_vm1, %v190_v5 }
   0x2   :  { %v16_v3 = vld [vmem:[%s254_s0 + $0x18] sm:$0x3]  ;;  %v19_v4 = vsel %vm18_vm0, %v14_v1, -inf  ;;  %v191_v10 = vmov 1966171168   ;;  %v226_v16 = vshrl.u32 %v63_v9, 7 }
   0x3   :  { %v20_v6 = vmax.f32 %v13_v0, %v19_v4  ;;  %v27_v7 = vsel %vm18_vm0, %v16_v3, -inf  ;;  %v67_v11 = vunpack.c.l.s4 %v191_v10  ;;  %v232_v23 = vld [vmem:[%s256_s1] sm:$0x3]  ;;  %vm151_vm10 = vcmask 1041409  }
   0x4   :  { %v28_v8 = vmax.f32 %v15_v2, %v27_v7  ;;  %v90_v39 = vsub.s32 0, %v226_v16  ;;  %v65_v41 = vadd.s32 8, %v226_v16  ;;  %vm144_vm6 = vcmp.lt.s32.totalorder %v226_v16, 2 }
   0x5   :  { %v21_v12 = vrot.slane %v20_v6, 4  ;;  %v68_v17 = vunpack.c.0.s8 %v67_v11  ;;  %vm147_vm9 = vcmp.gt.s32.totalorder %v232_v23, 0 }
   0x6   :  { %v29_v13 = vrot.slane %v28_v8, 4 }
   0x7   :  { %v22_v14 = vmax.f32 %v20_v6, %v21_v12  ;;  %v71_v22 = vsub.s32 %v68_v17, %v226_v16 }
   0x8   :  { %v30_v15 = vmax.f32 %v28_v8, %v29_v13 }
   0x9   :  { %v23_v18 = vrot.slane %v22_v14, 2  ;;  %v72_v28 = vrot.slane %v232_v23, %v71_v22 }
   0xa   :  { %v31_v19 = vrot.slane %v30_v15, 2 }
   0xb   :  { %v24_v20 = vmax.f32 %v22_v14, %v23_v18  ;;  %v73_v37 = vcombine.high %v72_v28, %v72_v28  ;;  %v80_v38 = vrot.slane %v72_v28, %v71_v22 }
   0xc   :  { %v32_v21 = vmax.f32 %v30_v15, %v31_v19 }
   0xd   :  { %v25_v24 = vrot.slane %v24_v20, 1  ;;  %v87_v40 = vrot.slane %v73_v37, %v71_v22  ;;  %v91_v42 = vrot.slane %v80_v38, %v90_v39 }
   0xe   :  { %v33_v25 = vrot.slane %v32_v21, 1 }
   0xf   :  { %v26_v26 = vmax.f32 %v24_v20, %v25_v24  ;;  %v95_v43 = vrot.slane %v87_v40, %v90_v39  ;;  %vm97_vm2 = vcmp.eq.s32.totalorder %v65_v41, %v91_v42  ;;  %vm96_vm4 = vcmp.eq.s32.totalorder %v226_v16, %v91_v42 }
  0x10   :  { %v34_v27 = vmax.f32 %v32_v21, %v33_v25 }
  0x11   :  { %v35_v29 = vsub.f32 %v13_v0, %v26_v26  ;;  %v36_v30 = vsub.f32 %v14_v1, %v26_v26  ;;  %vm99_vm3 = vcmp.eq.s32.totalorder %v65_v41, %v95_v43  ;;  %vm98_vm5 = vcmp.eq.s32.totalorder %v226_v16, %v95_v43  ;;  %v161_v16 = vld [vmem:[%s255_s2] sm:$0x3] }
  0x12   :  { %v37_v31 = vsub.f32 %v15_v2, %v34_v27  ;;  %v38_v32 = vsub.f32 %v16_v3, %v34_v27 }
  0x13   :  { %v39_v33 = vmul.f32 1.442695, %v35_v29  ;;  %v41_v34 = vmul.f32 1.442695, %v36_v30  ;;  %v101_v44 = vsel %vm97_vm2, %v36_v30, 0.0  ;;  %v100_v50 = vsel %vm96_vm4, %v35_v29, 0.0 }
  0x14   :  { %v43_v35 = vmul.f32 1.442695, %v37_v31  ;;  %v45_v36 = vmul.f32 1.442695, %v38_v32  ;;  %v103_v47 = vsel %vm99_vm3, %v38_v32, 0.0  ;;  %v104_v51 = vsel %vm18_vm0, %v101_v44, 0.0 }
  0x15   :  { %174 = vpow2.f32 %v39_v33  ;;  %v102_v55 = vsel %vm98_vm5, %v37_v31, 0.0  ;;  %v112_v56 = vsel %vm18_vm0, %v103_v47, 0.0  ;;  %v105_v59 = vadd.f32 %v104_v51, %v100_v50 }
  0x16   :  { %176 = vpow2.f32 %v41_v34  ;;  %v113_v62 = vadd.f32 %v112_v56, %v102_v55  ;;  %v141_v31 = vand.u32 127, %v63_v9 }
  0x17   :  { %178 = vpow2.f32 %v43_v35  ;;  %v106_v1 = vrot.slane %v105_v59, 4 }
  0x18   :  { %180 = vpow2.f32 %v45_v36  ;;  %v114_v4 = vrot.slane %v113_v62, 4  ;;  %vm145_vm7 = vcmp.lt.s32.totalorder %v141_v31, 8 }
  0x19   :  { %v107_v7 = vadd.f32 %v106_v1, %v105_v59  ;;  %vm146_vm8 = vmand %vm144_vm6, %vm145_vm7 }
  0x1a   :  { %v115_v11 = vadd.f32 %v114_v4, %v113_v62  ;;  %vm148_vm11 = vmand %vm146_vm8, %vm147_vm9 }
  0x1b   :  { %v108_v13 = vrot.slane %v107_v7, 2 }
  0x1c   :  { %v116_v14 = vrot.slane %v115_v11, 2 }
  0x1d   :  { %v109_v15 = vadd.f32 %v108_v13, %v107_v7 }
  0x1e   :  { %v117_v17 = vadd.f32 %v116_v14, %v115_v11 }
  0x1f   :  { %v110_v18 = vrot.slane %v109_v15, 1 }
  0x20   :  { %v118_v19 = vrot.slane %v117_v17, 1 }
  0x21   :  { %v111_v20 = vadd.f32 %v110_v18, %v109_v15 }
  0x22   :  { %v175_v45 = vpop.eup %174  ;;  %v119_v22 = vadd.f32 %v118_v19, %v117_v17 }
  0x23   :  { %v177_v46 = vpop.eup %176 }
  0x24   :  { %v179_v48 = vpop.eup %178  ;;  %v47_v49 = vsel %vm18_vm0, %v177_v46, 0.0 }
  0x25   :  { %v181_v52 = vpop.eup %180  ;;  %v48_v53 = vadd.f32 %v175_v45, %v47_v49 }
  0x26   :  { %v55_v54 = vsel %vm18_vm0, %v181_v52, 0.0 }
  0x27   :  { %v49_v57 = vrot.slane %v48_v53, 4  ;;  %v56_v58 = vadd.f32 %v179_v48, %v55_v54 }
  0x29   :  { %v50_v60 = vadd.f32 %v49_v57, %v48_v53  ;;  %v57_v61 = vrot.slane %v56_v58, 4 }
  0x2b   :  { %v51_v63 = vrot.slane %v50_v60, 2  ;;  %v58_v0 = vadd.f32 %v57_v61, %v56_v58 }
  0x2d   :  { %v52_v2 = vadd.f32 %v51_v63, %v50_v60  ;;  %v59_v3 = vrot.slane %v58_v0, 2 }
  0x2f   :  { %v53_v5 = vrot.slane %v52_v2, 1  ;;  %v60_v6 = vadd.f32 %v59_v3, %v58_v0 }
  0x31   :  { %v54_v8 = vadd.f32 %v53_v5, %v52_v2  ;;  %v61_v10 = vrot.slane %v60_v6, 1 }
  0x33   :  { %v62_v12 = vadd.f32 %v61_v10, %v60_v6  ;;  %182 = vlog2.f32 %v54_v8 }
  0x35   :  { %184 = vlog2.f32 %v62_v12 }
  0x40   :  { %v183_v21 = vpop.eup %182 }
  0x41   :  { %v121_v24 = vmul.f32 0.6931472, %v183_v21 }
  0x42   :  { %v185_v25 = vpop.eup %184 }
  0x43   :  { %v123_v26 = vmul.f32 0.6931472, %v185_v25  ;;  %v124_v27 = vsub.f32 %v111_v20, %v121_v24 }
  0x45   :  { %v125_v28 = vsub.f32 %v119_v22, %v123_v26  ;;  %v126_v29 = vmul.f32 1.442695, %v124_v27 }
  0x47   :  { %186 = vpow2.f32 %v126_v29  ;;  %v128_v30 = vmul.f32 1.442695, %v125_v28 }
  0x49   :  { %188 = vpow2.f32 %v128_v30 }
  0x54   :  { %v187_v32 = vpop.eup %186 }
  0x55   :  { %v130_v33 = vsub.f32 1.0, %v187_v32 }
  0x56   :  { %v189_v34 = vpop.eup %188 }
  0x57   :  { %v131_v35 = vsub.f32 1.0, %v189_v34  ;;  %v132_v36 = vmul.f32 %v130_v33, %v130_v33 }
  0x59   :  { %v133_v37 = vmul.f32 %v131_v35, %v131_v35  ;;  %v134_v38 = vmul.f32 -1.0, %v132_v36 }
  0x5b   :  { %v135_v39 = vmul.f32 -1.0, %v133_v37  ;;  %v136_v40 = vmul.f32 %v134_v38, %v124_v27 }
  0x5d   :  { %v137_v41 = vmul.f32 %v135_v39, %v125_v28 }
  0x5f   :  { %v152_v42 = vsel %vm151_vm10, %v137_v41, %v136_v40 }
  0x60   :  { %v154_v9 = vsel %vm148_vm11, %v152_v42, 0.0 }
  0x61   :  { %v162_v43 = vsel %vm18_vm0, %v154_v9, 0.0 }
  0x62   :  { %163 = vadd.xlane.f32.xlu0 %v162_v43 }
  0xeb   :  { %v164_v44 = vpop.xlane.xlu0 %163 }
  0xec   :  { %v165_v45 = vadd.f32 %v164_v44, %v161_v16 }
  0xee   :  { %167 = vst.msk [vmem:[%s255_s2] sm:$0x3] %vm159_vm1, %v165_v45 }

</bundles_post_ra>
